<compile_context>
chip_gen: v7x
topology: tpu7x:2x2x1
jax: 0.10.0
libtpu: 0.0.40
codegen_flags: <defaults>
</compile_context>

<pallas_src>
import functools

import jax
import jax.numpy as jnp
from jax.experimental import pallas as pl
from jax.experimental.pallas import tpu as pltpu


def rib_loss_kernel(dist_ref, logits_ref, tgt_ref, out_ref, acc_ref, *,
                    lam, m_rows, dist_rows, n_rows,
                    n_dist_tiles, n_logit_tiles, tile_dm, tile_n):
    i = pl.program_id(0)

    @pl.when(i == 0)
    def _init():
        acc_ref[0] = jnp.float32(0.0)   # entropy partial sum
        acc_ref[1] = jnp.float32(0.0)   # cross-entropy partial sum

    # --- entropy partial:  sum(-(d+eps)*log(d+eps)) over valid rows of this tile ---
    dist = dist_ref[...].astype(jnp.float32)                       # (tile_dm, Kd)
    drow = jax.lax.broadcasted_iota(jnp.int32, dist.shape, 0) + i * tile_dm
    dvalid = (drow < dist_rows) & (i < n_dist_tiles)
    d = dist + jnp.float32(1e-7)
    en = jnp.where(dvalid, -d * jnp.log(d), 0.0)
    acc_ref[0] = acc_ref[0] + jnp.sum(en)

    # --- cross-entropy partial:  sum over valid rows of (logsumexp - logits[target]) ---
    logits = logits_ref[...].astype(jnp.float32)                   # (tile_n, C)
    tgt = tgt_ref[...]                                             # (tile_n, 1) int32
    lrow = jax.lax.broadcasted_iota(jnp.int32, (tile_n, 1), 0) + i * tile_n
    lvalid = (lrow < n_rows) & (i < n_logit_tiles)                 # (tile_n, 1)

    row_max = jnp.max(logits, axis=-1, keepdims=True)              # (tile_n, 1)
    sum_exp = jnp.sum(jnp.exp(logits - row_max), axis=-1, keepdims=True)
    cols = jax.lax.broadcasted_iota(jnp.int32, logits.shape, 1)
    picked = jnp.sum(jnp.where(cols == tgt, logits, 0.0),
                     axis=-1, keepdims=True)                       # (tile_n, 1)
    ce_rows = row_max + jnp.log(sum_exp) - picked                  # (tile_n, 1)
    acc_ref[1] = acc_ref[1] + jnp.sum(jnp.where(lvalid, ce_rows, 0.0))

    # --- finalize on the last tile ---
    @pl.when(i == pl.num_programs(0) - 1)
    def _finalize():
        loss_entr = acc_ref[0] / jnp.float32(m_rows)
        loss_cross = acc_ref[1] / jnp.float32(n_rows)
        out_ref[0] = loss_cross - jnp.float32(lam) * loss_entr
        out_ref[1] = loss_cross
        out_ref[2] = loss_entr


def _row_tile(rows, cols, itemsize, budget_bytes=2 << 20):
    """Largest row tile (multiple of 8, or full) keeping a tile under ~2 MiB."""
    if rows <= 8 or rows * cols * itemsize <= budget_bytes:
        return rows
    t = (budget_bytes // max(1, cols * itemsize)) // 8 * 8
    return int(max(8, min(rows, t)))


def rib_loss(dist, outputs, targets, lam):
    """Returns (loss, loss_cross, loss_entr) as scalar float32 arrays."""
    m_rows = dist.shape[-2]

    # Lane-dense view for the entropy term when the element count allows it
    # (the entropy sum is row-structure free; only the /m_rows uses the true M).
    total = dist.size
    if total % 128 == 0:
        dist2d = dist.reshape(total // 128, 128)
    else:
        dist2d = dist.reshape(-1, dist.shape[-1])
    dm, dk = dist2d.shape

    n, c = outputs.shape
    tgt2d = targets.astype(jnp.int32).reshape(n, 1)

    tile_dm = _row_tile(dm, dk, dist2d.dtype.itemsize)
    tile_n = _row_tile(n, c, outputs.dtype.itemsize)

    t_dist = pl.cdiv(dm, tile_dm)
    t_log = pl.cdiv(n, tile_n)
    num_tiles = max(t_dist, t_log)

    kernel = functools.partial(
        rib_loss_kernel,
        lam=float(lam), m_rows=m_rows, dist_rows=dm, n_rows=n,
        n_dist_tiles=t_dist, n_logit_tiles=t_log,
        tile_dm=tile_dm, tile_n=tile_n)

    out = pl.pallas_call(
        kernel,
        out_shape=jax.ShapeDtypeStruct((3,), jnp.float32),
        grid=(num_tiles,),
        in_specs=[
            # clamp the block index for whichever operand runs out of tiles first;
            # the kernel masks those contributions to zero.
            pl.BlockSpec((tile_dm, dk), lambda i: (jnp.minimum(i, t_dist - 1), 0)),
            pl.BlockSpec((tile_n, c), lambda i: (jnp.minimum(i, t_log - 1), 0)),
            pl.BlockSpec((tile_n, 1), lambda i: (jnp.minimum(i, t_log - 1), 0)),
        ],
        out_specs=pl.BlockSpec((3,), lambda i: (0,),
                               memory_space=pltpu.MemorySpace.SMEM),
        scratch_shapes=[pltpu.SMEM((2,), jnp.float32)],
        compiler_params=pltpu.CompilerParams(
            # grid axis carries the scalar accumulators -> reduction -> arbitrary.
            dimension_semantics=("arbitrary",),
            vmem_limit_bytes=32 << 20),
    )(dist2d, outputs, tgt2d)
    return out[0], out[1], out[2]


def _reference(dist, outputs, targets, lam):
    # pure-JAX reference mirroring the PyTorch module
    d = dist + 1e-7
    en = -d * jnp.log(d)
    loss_entr = jnp.sum(en) / dist.shape[-2]
    logp = jax.nn.log_softmax(outputs, axis=-1)
    loss_cross = -jnp.mean(jnp.take_along_axis(logp, targets[:, None], axis=-1))
    loss = loss_cross - lam * loss_entr
    return loss, loss_cross, loss_entr


if __name__ == "__main__":
    key = jax.random.PRNGKey(0)
    k1, k2, k3 = jax.random.split(key, 3)

    LAM = 0.1
    M, K = 8, 16     # dist: (M, K) rows of a distribution
    N, C = 8, 32     # logits: (N, C), targets: (N,)

    dist = jax.nn.softmax(jax.random.normal(k1, (M, K), dtype=jnp.float32), axis=-1)
    outputs = jax.random.normal(k2, (N, C), dtype=jnp.float32)
    targets = jax.random.randint(k3, (N,), 0, C, dtype=jnp.int32)

    loss, loss_cross, loss_entr = rib_loss(dist, outputs, targets, LAM)
    jax.block_until_ready((loss, loss_cross, loss_entr))

    ref_loss, ref_cross, ref_entr = _reference(dist, outputs, targets, LAM)
    assert jnp.allclose(loss, ref_loss, atol=1e-4, rtol=1e-4)
    assert jnp.allclose(loss_cross, ref_cross, atol=1e-4, rtol=1e-4)
    assert jnp.allclose(loss_entr, ref_entr, atol=1e-4, rtol=1e-4)

    print("KERNEL_OK")
</pallas_src>

<mosaic_0001>
module attributes {stable_mosaic.version = 11 : i64} {
  func.func @rib_loss_kernel(%arg0: i32, %arg1: memref<1x128xf32, #tpu.memory_space<vmem>>, %arg2: memref<8x32xf32, #tpu.memory_space<vmem>>, %arg3: memref<8x1xi32, #tpu.memory_space<vmem>>, %arg4: memref<3xf32, #tpu.memory_space<smem>>, %arg5: memref<2xf32, #tpu.memory_space<smem>>) attributes {dimension_semantics = [#tpu.dimension_semantics<arbitrary>], iteration_bounds = array<i64: 1>, scalar_prefetch = 0 : i64, scratch_operands = 1 : i64, tpu.core_type = #tpu.core_type<tc>, window_params = [{transform_indices = @transform_0, window_bounds = array<i64: 1, 128>}, {transform_indices = @transform_1, window_bounds = array<i64: 8, 32>}, {transform_indices = @transform_2, window_bounds = array<i64: 8, 1>}, {transform_indices = @transform_3, window_bounds = array<i64: 3>}]} {
    %c0_i32 = arith.constant 0 : i32
    %0 = arith.cmpi eq, %arg0, %c0_i32 : i32
    %1 = arith.extui %0 : i1 to i32
    %c0_i32_0 = arith.constant 0 : i32
    %2 = arith.cmpi ne, %1, %c0_i32_0 : i32
    scf.if %2 {
      %cst_24 = arith.constant 0.000000e+00 : f32
      %c0_25 = arith.constant 0 : index
      %68 = memref.load %arg5[%c0_25] : memref<2xf32, #tpu.memory_space<smem>>
      memref.store %cst_24, %arg5[%c0_25] : memref<2xf32, #tpu.memory_space<smem>>
      %cst_26 = arith.constant 0.000000e+00 : f32
      %c1_27 = arith.constant 1 : index
      %69 = memref.load %arg5[%c1_27] : memref<2xf32, #tpu.memory_space<smem>>
      memref.store %cst_26, %arg5[%c1_27] : memref<2xf32, #tpu.memory_space<smem>>
    } else {
    }
    %c0 = arith.constant 0 : index
    %c0_1 = arith.constant 0 : index
    %3 = vector.load %arg1[%c0, %c0_1] : memref<1x128xf32, #tpu.memory_space<vmem>>, vector<1x128xf32>
    %4 = tpu.iota {dimensions = array<i32: 0>} : vector<1x128xi32>
    %c1_i32 = arith.constant 1 : i32
    %5 = arith.muli %arg0, %c1_i32 : i32
    %6 = vector.broadcast %5 : i32 to vector<1x128xi32>
    %7 = arith.addi %4, %6 : vector<1x128xi32>
    %c1_i32_2 = arith.constant 1 : i32
    %8 = vector.broadcast %c1_i32_2 : i32 to vector<1x128xi32>
    %9 = arith.cmpi slt, %7, %8 : vector<1x128xi32>
    %c1_i32_3 = arith.constant 1 : i32
    %10 = arith.cmpi slt, %arg0, %c1_i32_3 : i32
    %11 = vector.broadcast %10 : i1 to vector<1x128xi1>
    %12 = arith.andi %9, %11 : vector<1x128xi1>
    %cst = arith.constant 1.000000e-07 : f32
    %13 = vector.broadcast %cst : f32 to vector<1x128xf32>
    %14 = arith.addf %3, %13 : vector<1x128xf32>
    %cst_4 = arith.constant 0.000000e+00 : f32
    %15 = vector.broadcast %cst_4 : f32 to vector<1x128xf32>
    %16 = arith.subf %15, %14 : vector<1x128xf32>
    %17 = math.log %14 : vector<1x128xf32>
    %18 = arith.mulf %16, %17 : vector<1x128xf32>
    %cst_5 = arith.constant 0.000000e+00 : f32
    %19 = vector.broadcast %cst_5 : f32 to vector<1x128xf32>
    %20 = arith.select %12, %18, %19 : vector<1x128xi1>, vector<1x128xf32>
    %c0_6 = arith.constant 0 : index
    %21 = memref.load %arg5[%c0_6] : memref<2xf32, #tpu.memory_space<smem>>
    %22 = vector.shape_cast %20 : vector<1x128xf32> to vector<1x1x128xf32>
    %cst_7 = arith.constant dense<0.000000e+00> : vector<1xf32>
    %23 = vector.multi_reduction <add>, %22, %cst_7 [1, 2] : vector<1x1x128xf32> to vector<1xf32>
    %24 = vector.shape_cast %23 : vector<1xf32> to vector<1x1x1xf32>
    %25 = vector.extract %24[0, 0, 0] : f32 from vector<1x1x1xf32>
    %26 = arith.addf %21, %25 : f32
    %c0_8 = arith.constant 0 : index
    %27 = memref.load %arg5[%c0_8] : memref<2xf32, #tpu.memory_space<smem>>
    memref.store %26, %arg5[%c0_8] : memref<2xf32, #tpu.memory_space<smem>>
    %c0_9 = arith.constant 0 : index
    %c0_10 = arith.constant 0 : index
    %28 = vector.load %arg2[%c0_9, %c0_10] : memref<8x32xf32, #tpu.memory_space<vmem>>, vector<8x32xf32>
    %c0_11 = arith.constant 0 : index
    %c0_12 = arith.constant 0 : index
    %29 = vector.load %arg3[%c0_11, %c0_12] : memref<8x1xi32, #tpu.memory_space<vmem>>, vector<8x1xi32>
    %30 = tpu.iota {dimensions = array<i32: 0>} : vector<8x1xi32>
    %c8_i32 = arith.constant 8 : i32
    %31 = arith.muli %arg0, %c8_i32 : i32
    %32 = vector.broadcast %31 : i32 to vector<8x1xi32>
    %33 = arith.addi %30, %32 : vector<8x1xi32>
    %c8_i32_13 = arith.constant 8 : i32
    %34 = vector.broadcast %c8_i32_13 : i32 to vector<8x1xi32>
    %35 = arith.cmpi slt, %33, %34 : vector<8x1xi32>
    %c1_i32_14 = arith.constant 1 : i32
    %36 = arith.cmpi slt, %arg0, %c1_i32_14 : i32
    %37 = vector.broadcast %36 : i1 to vector<8x1xi1>
    %38 = arith.andi %35, %37 : vector<8x1xi1>
    %cst_15 = arith.constant dense<0xFF800000> : vector<8xf32>
    %39 = vector.multi_reduction <maximumf>, %28, %cst_15 [1] : vector<8x32xf32> to vector<8xf32>
    %40 = vector.shape_cast %39 : vector<8xf32> to vector<8x1xf32>
    %41 = vector.broadcast %40 : vector<8x1xf32> to vector<8x32xf32>
    %42 = arith.subf %28, %41 : vector<8x32xf32>
    %43 = math.exp %42 : vector<8x32xf32>
    %cst_16 = arith.constant dense<0.000000e+00> : vector<8xf32>
    %44 = vector.multi_reduction <add>, %43, %cst_16 [1] : vector<8x32xf32> to vector<8xf32>
    %45 = vector.shape_cast %44 : vector<8xf32> to vector<8x1xf32>
    %46 = tpu.iota {dimensions = array<i32: 1>} : vector<8x32xi32>
    %47 = vector.broadcast %29 : vector<8x1xi32> to vector<8x32xi32>
    %48 = arith.cmpi eq, %46, %47 : vector<8x32xi32>
    %cst_17 = arith.constant 0.000000e+00 : f32
    %49 = vector.broadcast %cst_17 : f32 to vector<8x32xf32>
    %50 = arith.select %48, %28, %49 : vector<8x32xi1>, vector<8x32xf32>
    %cst_18 = arith.constant dense<0.000000e+00> : vector<8xf32>
    %51 = vector.multi_reduction <add>, %50, %cst_18 [1] : vector<8x32xf32> to vector<8xf32>
    %52 = vector.shape_cast %51 : vector<8xf32> to vector<8x1xf32>
    %53 = math.log %45 : vector<8x1xf32>
    %54 = arith.addf %40, %53 : vector<8x1xf32>
    %55 = arith.subf %54, %52 : vector<8x1xf32>
    %c1 = arith.constant 1 : index
    %56 = memref.load %arg5[%c1] : memref<2xf32, #tpu.memory_space<smem>>
    %cst_19 = arith.constant 0.000000e+00 : f32
    %57 = vector.broadcast %cst_19 : f32 to vector<8x1xf32>
    %58 = arith.select %38, %55, %57 : vector<8x1xi1>, vector<8x1xf32>
    %59 = vector.shape_cast %58 : vector<8x1xf32> to vector<1x8x1xf32>
    %cst_20 = arith.constant dense<0.000000e+00> : vector<1xf32>
    %60 = vector.multi_reduction <add>, %59, %cst_20 [1, 2] : vector<1x8x1xf32> to vector<1xf32>
    %61 = vector.shape_cast %60 : vector<1xf32> to vector<1x1x1xf32>
    %62 = vector.extract %61[0, 0, 0] : f32 from vector<1x1x1xf32>
    %63 = arith.addf %56, %62 : f32
    %c1_21 = arith.constant 1 : index
    %64 = memref.load %arg5[%c1_21] : memref<2xf32, #tpu.memory_space<smem>>
    memref.store %63, %arg5[%c1_21] : memref<2xf32, #tpu.memory_space<smem>>
    %c0_i32_22 = arith.constant 0 : i32
    %65 = arith.cmpi eq, %arg0, %c0_i32_22 : i32
    %66 = arith.extui %65 : i1 to i32
    %c0_i32_23 = arith.constant 0 : i32
    %67 = arith.cmpi ne, %66, %c0_i32_23 : i32
    scf.if %67 {
      %c0_24 = arith.constant 0 : index
      %68 = memref.load %arg5[%c0_24] : memref<2xf32, #tpu.memory_space<smem>>
      %cst_25 = arith.constant 8.000000e+00 : f32
      %69 = arith.divf %68, %cst_25 : f32
      %c1_26 = arith.constant 1 : index
      %70 = memref.load %arg5[%c1_26] : memref<2xf32, #tpu.memory_space<smem>>
      %cst_27 = arith.constant 8.000000e+00 : f32
      %71 = arith.divf %70, %cst_27 : f32
      %cst_28 = arith.constant 1.000000e-01 : f32
      %72 = arith.mulf %cst_28, %69 : f32
      %73 = arith.subf %71, %72 : f32
      %c0_29 = arith.constant 0 : index
      %74 = memref.load %arg4[%c0_29] : memref<3xf32, #tpu.memory_space<smem>>
      memref.store %73, %arg4[%c0_29] : memref<3xf32, #tpu.memory_space<smem>>
      %c1_30 = arith.constant 1 : index
      %75 = memref.load %arg4[%c1_30] : memref<3xf32, #tpu.memory_space<smem>>
      memref.store %71, %arg4[%c1_30] : memref<3xf32, #tpu.memory_space<smem>>
      %c2 = arith.constant 2 : index
      %76 = memref.load %arg4[%c2] : memref<3xf32, #tpu.memory_space<smem>>
      memref.store %69, %arg4[%c2] : memref<3xf32, #tpu.memory_space<smem>>
    } else {
    }
    return
  }
  func.func @transform_0(%arg0: i32) -> (i32, i32) {
    %c0_i32 = arith.constant 0 : i32
    %0 = arith.minsi %arg0, %c0_i32 : i32
    %c0_i32_0 = arith.constant 0 : i32
    %c0_i32_1 = arith.constant 0 : i32
    return %0, %c0_i32_0 : i32, i32
  }
  func.func @transform_1(%arg0: i32) -> (i32, i32) {
    %c0_i32 = arith.constant 0 : i32
    %0 = arith.minsi %arg0, %c0_i32 : i32
    %c0_i32_0 = arith.constant 0 : i32
    %c0_i32_1 = arith.constant 0 : i32
    return %0, %c0_i32_0 : i32, i32
  }
  func.func @transform_2(%arg0: i32) -> (i32, i32) {
    %c0_i32 = arith.constant 0 : i32
    %0 = arith.minsi %arg0, %c0_i32 : i32
    %c0_i32_0 = arith.constant 0 : i32
    %c0_i32_1 = arith.constant 0 : i32
    return %0, %c0_i32_0 : i32, i32
  }
  func.func @transform_3(%arg0: i32) -> i32 {
    %c0_i32 = arith.constant 0 : i32
    %c0_i32_0 = arith.constant 0 : i32
    return %c0_i32 : i32
  }
}

</mosaic_0001>

<bundles_post_ra>
// kernel: tpu_custom_call.1
= control target key start
LH: loop header
LB: loop body
LE: loop exit
PB: predicated region body
PF: predicated region fallthrough
CT: control target
= control target key end

     0   :  { %vm62_vm0 = vcmask 261120   ;;  %s207_s0 = inlined_call_operand.vmem [shape: f32[1,128], index: 0, kind: input, shape index: {}]   ;;  %s208_s1 = inlined_call_operand.vmem [shape: f32[8,32], index: 1, kind: input, shape index: {}]   ;;  %s209_s2 = inlined_call_operand.vmem [shape: s32[8,1], index: 2, kind: input, shape index: {}]   ;;  %s210_s3 = inlined_call_operand.hbm [shape: f32[3], index: 3, kind: output, shape index: {}]  }
   0x1   :  { %v55_v0 = vld [vmem:[%s208_s1] sm:$0xff] }
   0x2   :  { %8 = vsyncpa [#allocation4], 0  ;;  %v63_v1 = vsel %vm62_vm0, %v55_v0, -inf  ;;  %v161_v2 = vmov 0   ;;  %v56_v3 = vld [vmem:[%s209_s2] sm:$0xff]  ;;  %v24_v7 = vlaneseq  ;;  %vm41_vm3 = vcmask 1040384  }
   0x3   :  { %142 = vset.pattern.permute.xlu0 %v161_v2  ;;  %v23_v14 = vld [vmem:[%s207_s0] sm:$0x1]  ;;  %vm88_vm4 = vcmask 7168   ;;  %s149_s23 = scalar_lea.hbm %s210_s3, 16 }
   0x4   :  { %64 = vmax.xlane.f32.xlu0 %v63_v1  ;;  %v73_v8 = vand.u32 127, %v24_v7  ;;  %v34_v15 = vadd.f32 1e-07, %v23_v14  ;;  %v25_v19 = vshrl.u32 %v24_v7, 7  ;;  %p150_p0 = scmp.ne.s32.totalorder %s210_s3, %s149_s23  ;;  %p153_p1 = scmp.lt.u32.totalorder %s149_s23, %s210_s3 }
   0x6   :  { %v35_v17 = vsub.f32 0.0, %v34_v15  ;;  %vm28_vm2 = vcmp.lt.s32.totalorder %v25_v19, 1  ;;  %p155_p2 = pnand %p153_p1, %p150_p0 }
  0x1a   :  { %75 = vperm.xlu0 %142, %v56_v3  }
  0x91   :  { %v65_v4 = vpop.xlane.xlu0 %64 }
  0x92   :  { %v66_v5 = vsub.f32 %v55_v0, %v65_v4 }
  0x94   :  { %v67_v6 = vmul.f32 1.442695, %v66_v5 }
  0x96   :  { %143 = vpow2.f32 %v67_v6 }
  0x97   :  { %145 = vlog2.f32 %v34_v15 }
  0x99   :  { %v76_v9 = vpop.permute.xlu0 %75 }
  0x9a   :  { %vm77_vm1 = vcmp.eq.s32.totalorder %v73_v8, %v76_v9 }
  0x9b   :  { %v78_v11 = vsel %vm77_vm1, %v55_v0, 0.0 }
  0x9c   :  { %v79_v13 = vsel %vm62_vm0, %v78_v11, 0.0 }
  0xa0   :  { %v144_v10 = vpop.eup %143 }
  0xa1   :  { %v69_v12 = vsel %vm62_vm0, %v144_v10, 0.0  ;;  %v146_v16 = vpop.eup %145 }
  0xa2   :  { %70 = vadd.xlane.f32.xlu1 %v69_v12  ;;  %v37_v18 = vmul.f32 0.6931472, %v146_v16 }
  0xa4   :  { %v38_v20 = vmul.f32 %v37_v18, %v35_v17 }
  0xa6   :  { %80 = vadd.xlane.f32.xlu1 %v79_v13  ;;  %v39_v21 = vsel %vm28_vm2, %v38_v20, 0.0 }
  0xa7   :  { %v42_v22 = vsel %vm41_vm3, %v39_v21, 0.0 }
  0xaa   :  { %43 = vadd.xlane.f32.xlu1 %v42_v22 }
 0x12f   :  { %v71_v23 = vpop.xlane.xlu1 %70 }
 0x130   :  { %147 = vlog2.f32 %v71_v23 }
 0x133   :  { %v81_v26 = vpop.xlane.xlu1 %80 }
 0x137   :  { %v44_v30 = vpop.xlane.xlu1 %43 }
 0x138   :  { %v45_v31 = vrot.slane %v44_v30, 4 }
 0x13a   :  { %v148_v24 = vpop.eup %147  ;;  %v46_v32 = vadd.f32 %v45_v31, %v44_v30 }
 0x13b   :  { %v83_v25 = vmul.f32 0.6931472, %v148_v24 }
 0x13c   :  { %v47_v33 = vrot.slane %v46_v32, 2 }
 0x13d   :  { %v84_v27 = vadd.f32 %v83_v25, %v65_v4 }
 0x13e   :  { %v48_v34 = vadd.f32 %v47_v33, %v46_v32 }
 0x13f   :  { %v85_v28 = vsub.f32 %v84_v27, %v81_v26 }
 0x140   :  { %v49_v35 = vrot.slane %v48_v34, 1 }
 0x141   :  { %v89_v29 = vsel %vm88_vm4, %v85_v28, 0.0 }
 0x142   :  { %90 = vadd.xlane.f32.xlu1 %v89_v29  ;;  %v50_v36 = vadd.f32 %v49_v35, %v48_v34 }
 0x144   :  { %136 = vpush %v50_v36 }
 0x175   :  { %s137_s0 = spop %136 }
 0x176   :  { %s108_s2 = smul.f32 0.125, %s137_s0 }
 0x178   :  { %120 = sst [smem:[#allocation3 + $0x2]] %s108_s2  ;;  %s113_s17 = smul.f32 0.1, %s108_s2 }
 0x1cf   :  { %v91_v37 = vpop.xlane.xlu1 %90 }
 0x1d0   :  { %v92_v38 = vrot.slane %v91_v37, 4 }
 0x1d2   :  { %v93_v39 = vadd.f32 %v92_v38, %v91_v37 }
 0x1d4   :  { %v94_v40 = vrot.slane %v93_v39, 2 }
 0x1d6   :  { %v95_v41 = vadd.f32 %v94_v40, %v93_v39 }
 0x1d8   :  { %v96_v42 = vrot.slane %v95_v41, 1 }
 0x1da   :  { %v97_v43 = vadd.f32 %v96_v42, %v95_v41 }
 0x1dc   :  { %138 = vpush %v97_v43 }
 0x20d   :  { %s139_s18 = spop %138 }
 0x20e   :  { %s112_s19 = smul.f32 0.125, %s139_s18 }
 0x210   :  { %s114_s20 = ssub.f32 %s112_s19, %s113_s17 }
 0x211   :  { %118 = sst [smem:[#allocation3 + $0x1]] %s112_s19 }
 0x212   :  { %116 = sst [smem:[#allocation3]] %s114_s20 }
 0x213   :  { %158 = shalt.err (!%p155_p2)
}
 0x214   :  { %s162_s28 = smov [#allocation3]  }
 0x215   :  { %128 = dma.smem_to_hbm %s162_s28, 16, %s210_s3, [#allocation4]  }
 0x216   :  { %159 = dma.done.wait [#allocation4], 16  }
 0x217   :  { %160 = vsyncadd [#allocation4], 4294967280 }
 0x218   :  { %132 = sfence }
 0x219   :  { %133 = vsyncpa [#allocation4], 1 }

</bundles_post_ra>
